<compile_context>
chip_gen: v5e
topology: v5e:2x2
jax: 0.10.0
libtpu: 0.0.40
codegen_flags: <defaults>
</compile_context>

<pallas_src>
import functools

import jax
import jax.numpy as jnp
import numpy as np
from jax.experimental import pallas as pl
from jax.experimental.pallas import tpu as pltpu


# ---------------------------------------------------------------------------
# Parameter init (matches default_init(scale=0.1): fan_avg, uniform)
# ---------------------------------------------------------------------------
def nin_init_params(key, in_dim, num_units, init_scale=0.1, dtype=jnp.float32):
    scale = 1e-10 if init_scale == 0 else init_scale
    shape = (in_dim, num_units)
    # variance_scaling with in_axis=1, out_axis=0 on shape (in_dim, num_units):
    #   receptive_field_size = 1, fan_in = num_units, fan_out = in_dim
    fan_in = shape[1]
    fan_out = shape[0]
    denominator = (fan_in + fan_out) / 2.0
    variance = scale / denominator
    limit = np.sqrt(3.0 * variance)
    W = jax.random.uniform(key, shape, dtype=dtype, minval=-limit, maxval=limit)
    b = jnp.zeros((num_units,), dtype=dtype)
    return W, b


# ---------------------------------------------------------------------------
# Pallas kernel:  o[b, :, j-tile] = W^T @ x[b, :, j-tile] + bias
# ---------------------------------------------------------------------------
def _nin_kernel(x_ref, wt_ref, b_ref, o_ref):
    # x_ref : (1, C, T)    current batch's channel-rows, lane-dense spatial tile
    # wt_ref: (N, C)       transposed weight, resident in VMEM across the grid
    # b_ref : (N, 1)       bias column, broadcast over lanes
    # o_ref : (1, N, T)    lane-dense NCHW output tile
    acc = jnp.dot(wt_ref[...], x_ref[0], preferred_element_type=jnp.float32)
    o_ref[0] = (acc + b_ref[...]).astype(o_ref.dtype)


def _pick_spatial_tile(hw, cap=4096):
    """Largest lane-dense tile (multiple of 128) that divides hw, capped.

    Falls back to the full spatial axis (always a legal block) so there is
    never a padding / ragged-block path.
    """
    if hw <= cap:
        return hw
    t = cap - (cap % 128)
    while t >= 128:
        if hw % t == 0:
            return t
        t -= 128
    return hw


@jax.jit
def nin_forward(x, W, b):
    """Forward of NIN. x: (B, C, H, W) NCHW. Returns (B, num_units, H, W)."""
    B, C, H, Wd = x.shape
    Cin, N = W.shape
    assert C == Cin
    HW = H * Wd
    tile = _pick_spatial_tile(HW)

    # Free reshapes (NCHW is contiguous): no transposes, no pads, no copies.
    x3d = x.reshape(B, C, HW)
    wT = W.T                      # (N, C) — tiny one-time transpose
    b2d = b.reshape(N, 1)

    grid = (B, HW // tile)

    out3d = pl.pallas_call(
        _nin_kernel,
        out_shape=jax.ShapeDtypeStruct((B, N, HW), x.dtype),
        grid_spec=pltpu.PrefetchScalarGridSpec(
            num_scalar_prefetch=0,
            grid=grid,
            in_specs=[
                # spatial tile of one batch's channel rows (lane-dense last dim)
                pl.BlockSpec((1, C, tile), lambda bi, j: (bi, 0, j)),
                # full transposed weight, resident
                pl.BlockSpec((N, C), lambda bi, j: (0, 0)),
                # bias column, resident
                pl.BlockSpec((N, 1), lambda bi, j: (0, 0)),
            ],
            out_specs=pl.BlockSpec((1, N, tile), lambda bi, j: (bi, 0, j)),
        ),
        compiler_params=pltpu.CompilerParams(
            dimension_semantics=("parallel", "parallel")),
    )(x3d, wT, b2d)

    # Free reshape back to NCHW image layout.
    return out3d.reshape(B, N, H, Wd)


# ---------------------------------------------------------------------------
# Reference (pure JAX) for sanity check — matches the PyTorch forward exactly.
# ---------------------------------------------------------------------------
def nin_forward_ref(x, W, b):
    x_nhwc = jnp.transpose(x, (0, 2, 3, 1))
    y = jnp.tensordot(x_nhwc, W, axes=1) + b
    return jnp.transpose(y, (0, 3, 1, 2))


if __name__ == "__main__":
    key = jax.random.PRNGKey(0)
    k_x, k_w = jax.random.split(key)

    B, C, H, Wd = 2, 4, 16, 16
    num_units = 8

    x = jax.random.normal(k_x, (B, C, H, Wd), dtype=jnp.float32)
    W, b = nin_init_params(k_w, C, num_units, init_scale=0.1)

    y = nin_forward(x, W, b)
    y = jax.block_until_ready(y)

    y_ref = nin_forward_ref(x, W, b)
    assert y.shape == (B, num_units, H, Wd), y.shape
    np.testing.assert_allclose(np.asarray(y), np.asarray(y_ref),
                               rtol=1e-5, atol=1e-5)
    print("KERNEL_OK")
</pallas_src>

<mosaic_0001>
module attributes {stable_mosaic.version = 11 : i64} {
  func.func @_nin_kernel(%arg0: i32, %arg1: i32, %arg2: memref<1x4x256xf32, #tpu.memory_space<vmem>>, %arg3: memref<8x4xf32, #tpu.memory_space<vmem>>, %arg4: memref<8x1xf32, #tpu.memory_space<vmem>>, %arg5: memref<1x8x256xf32, #tpu.memory_space<vmem>>) attributes {dimension_semantics = [#tpu.dimension_semantics<parallel>, #tpu.dimension_semantics<parallel>], iteration_bounds = array<i64: 2, 1>, scalar_prefetch = 0 : i64, scratch_operands = 0 : i64, tpu.core_type = #tpu.core_type<tc>, window_params = [{transform_indices = @transform_0, window_bounds = array<i64: 1, 4, 256>}, {pipeline_mode = #tpu.pipeline_mode<synchronous>, transform_indices = @transform_1, window_bounds = array<i64: 8, 4>}, {pipeline_mode = #tpu.pipeline_mode<synchronous>, transform_indices = @transform_2, window_bounds = array<i64: 8, 1>}, {transform_indices = @transform_3, window_bounds = array<i64: 1, 8, 256>}]} {
    %c0 = arith.constant 0 : index
    %c0_0 = arith.constant 0 : index
    %0 = vector.load %arg3[%c0, %c0_0] : memref<8x4xf32, #tpu.memory_space<vmem>>, vector<8x4xf32>
    %c0_1 = arith.constant 0 : index
    %c0_2 = arith.constant 0 : index
    %c0_3 = arith.constant 0 : index
    %1 = vector.load %arg2[%c0_1, %c0_2, %c0_3] : memref<1x4x256xf32, #tpu.memory_space<vmem>>, vector<1x4x256xf32>
    %2 = vector.shape_cast %1 : vector<1x4x256xf32> to vector<4x256xf32>
    %cst = arith.constant dense<0.000000e+00> : vector<8x256xf32>
    %3 = tpu.matmul %0, %2, %cst {dimension_numbers = #tpu.dot_dimension_numbers<[1], [0], [0], [1], [0, 0, 1, 1], [], []>} : vector<8x4xf32>, vector<4x256xf32>, vector<8x256xf32> -> vector<8x256xf32>
    %c0_4 = arith.constant 0 : index
    %c0_5 = arith.constant 0 : index
    %4 = vector.load %arg4[%c0_4, %c0_5] : memref<8x1xf32, #tpu.memory_space<vmem>>, vector<8x1xf32>
    %5 = vector.broadcast %4 : vector<8x1xf32> to vector<8x256xf32>
    %6 = arith.addf %3, %5 : vector<8x256xf32>
    %c0_6 = arith.constant 0 : index
    %c0_7 = arith.constant 0 : index
    %c0_8 = arith.constant 0 : index
    %7 = vector.load %arg5[%c0_6, %c0_7, %c0_8] : memref<1x8x256xf32, #tpu.memory_space<vmem>>, vector<1x8x256xf32>
    %8 = vector.shape_cast %7 : vector<1x8x256xf32> to vector<8x256xf32>
    %9 = vector.shape_cast %6 : vector<8x256xf32> to vector<1x8x256xf32>
    tpu.vector_store %arg5[%c0_6, %c0_7, %c0_8], %9 {strides = array<i32>} : memref<1x8x256xf32, #tpu.memory_space<vmem>>, vector<1x8x256xf32>,
    return
  }
  func.func @transform_0(%arg0: i32, %arg1: i32) -> (i32, i32, i32) {
    %c0_i32 = arith.constant 0 : i32
    %c0_i32_0 = arith.constant 0 : i32
    return %arg0, %c0_i32, %arg1 : i32, i32, i32
  }
  func.func @transform_1(%arg0: i32, %arg1: i32) -> (i32, i32) {
    %c0_i32 = arith.constant 0 : i32
    %c0_i32_0 = arith.constant 0 : i32
    %c0_i32_1 = arith.constant 0 : i32
    return %c0_i32, %c0_i32_0 : i32, i32
  }
  func.func @transform_2(%arg0: i32, %arg1: i32) -> (i32, i32) {
    %c0_i32 = arith.constant 0 : i32
    %c0_i32_0 = arith.constant 0 : i32
    %c0_i32_1 = arith.constant 0 : i32
    return %c0_i32, %c0_i32_0 : i32, i32
  }
  func.func @transform_3(%arg0: i32, %arg1: i32) -> (i32, i32, i32) {
    %c0_i32 = arith.constant 0 : i32
    %c0_i32_0 = arith.constant 0 : i32
    return %arg0, %c0_i32, %arg1 : i32, i32, i32
  }
}

</mosaic_0001>

<bundles_post_ra>
// kernel: nin_forward.1
= control target key start
LH: loop header
LB: loop body
LE: loop exit
PB: predicated region body
PF: predicated region fallthrough
CT: control target
= control target key end

     0   :  { %s448_s12 = smov 0   ;;  %s450_s13 = smov 0   ;;  %s487_s0 = inlined_call_operand.vmem [shape: f32[2,4,256], index: 0, kind: input, shape index: {}]   ;;  %s488_s1 = inlined_call_operand.vmem [shape: f32[8,4], index: 1, kind: input, shape index: {}]   ;;  %s489_s2 = inlined_call_operand.vmem [shape: f32[8,1], index: 2, kind: input, shape index: {}]   ;;  %s490_s3 = inlined_call_operand.vmem [shape: f32[2,8,256], index: 3, kind: output, shape index: {}]  }
   0x1   :  { %s452_s14 = smov 0  }
   0x2 LB: > { %s25_s15 = sadd.s32 1, %s421_s13  ;;  %p364_p0 = scmp.ge.s32.totalorder %s425_s14, 1  ;;  %s425_s14 = sphi %s452_s14, %s13_s14   ;;  %s421_s13 = sphi %s450_s13, %s492_s13   ;;  %s417_s12 = sphi %s448_s12, %s491_s12  }
   0x3   : > { %p27_p1 = scmp.ge.s32.totalorder %s25_s15, 2  ;;  %p158_p2 = scmp.lt.s32.totalorder %s425_s14, 3 }
   0x5   : > { %s494_s15 = smov (%p27_p1, %s25_s15), 0  ;;  %p159_p3 = pnand %p364_p0, %p158_p2 }
   0x6   : > { %p191_p4 = scmp.lt.s32.totalorder (!%p159_p3), %s417_s12, 1 }
   0x7   : > { %162 = sbr.rel (%p159_p3) target bundleno = 155 (0x9b), region = 32 }
   0xc   : > { %v212_v0 = vld [vmem:[%s489_s2] sm:$0xff]  ;;  %v427_v1 = vmov 0   ;;  %s496_s12 = smov (!%p191_p4, %s417_s12), 1  ;;  %vm226_vm0 = vcmask 1043456   ;;  %vm222_vm1 = vcmask 31744  }
   0xd   : > { %402 = vset.pattern.permute.xlu0 %v427_v1  ;;  %s375_s18 = sshll.u32 %s496_s12, 3  ;;  %v210_v3 = vld [vmem:[%s488_s1] sm:$0xff]  ;;  %s376_s24 = sshll.u32 %s496_s12, 4 }
   0xe   : > { %215 = vperm.xlu0 %402, %v212_v0   ;;  %s198_s21 = scalar_lea.vmem %s487_s0, %s375_s18  ;;  %s208_s27 = scalar_lea.vmem %s490_s3, %s376_s24 }
   0xf   : > { %v211_v2 = vld [vmem:[%s198_s21] sm:$0xff] }
  0x10   : > { %219 = vst [vmem:[#allocation1] ss:$2 sm:$0xff] %v211_v2 }
  0x17   : > { %v220_v4 = vld.sshfl [vmem:[#allocation1] sm:$0xff pattern:$0x75316420]  ;;  %v221_v5 = vld.sshfl [vmem:[#allocation1 + $0x8] sm:$0xff pattern:$0x75316420] }
  0x18   : > { %369 = vmatpush.msk.msra.mxu0 %vm226_vm0, %v220_v4  ;;  %371 = vmatpush.msk.msra.mxu1 %vm226_vm0, %v221_v5 }
  0x19   : > { %370 = vmatmul.msk.f32.vlgmr.msra.gmra.mxu0 %vm222_vm1, %v210_v3  ;;  %372 = vmatmul.msk.f32.vlgmr.msra.gmra.mxu1 %vm222_vm1, %v210_v3 }
  0x80   : > { %v216_v6 = vpop.permute.xlu0 %215 }
  0x96   : > { %v248_v7 = vpop.f32.mrf.mxu0  ;;  %v268_v8 = vpop.f32.mrf.mxu1 }
  0x97   : > { %v249_v9 = vadd.f32 %v248_v7, %v216_v6  ;;  %v269_v10 = vadd.f32 %v268_v8, %v216_v6 }
  0x99   : > { %271 = vst [vmem:[%s208_s27] sm:$0xff] %v249_v9 }
  0x9a   : > { %272 = vst [vmem:[%s208_s27 + $0x8] sm:$0xff] %v269_v10 }
  0x9b PF: > { %s13_s14 = sadd.s32 1, %s425_s14   ;;  %s491_s12 = smov %s421_s13 }
  0x9c   : > { %p10_p5 = scmp.ge.s32.totalorder %s13_s14, 4   ;;  %s492_s13 = smov %s494_s15 }
  0x9e   :  { %12 = sbr.rel (!%p10_p5) target bundleno = 2 (0x2), region = 62 }

</bundles_post_ra>
